<compile_context>
chip_gen: v7x
topology: tpu7x:2x2x1
jax: 0.10.0
libtpu: 0.0.40
codegen_flags: <defaults>
</compile_context>

<pallas_src>
import functools

import jax
import jax.numpy as jnp
from jax.experimental import pallas as pl
from jax.experimental.pallas import tpu as pltpu


def _round_up(a, b):
    return ((a + b - 1) // b) * b


def _round_down(a, b):
    return (a // b) * b


def _vmem_config(vmem_block_bytes):
    """Generation-aware VMEM budget (v7x: 64 MiB physical VMEM, v5e/v6e: 128 MiB)."""
    try:
        vmem_cap = int(pltpu.get_tpu_info().vmem_capacity_bytes)
    except Exception:
        vmem_cap = 64 * 1024 * 1024  # conservative (v7x-sized) fallback
    if vmem_block_bytes is None:
        # Budget for ONE single-buffered (x, target) block pair. Double-buffering
        # plus in-kernel f32 temporaries multiply the footprint by ~4-5x, so keep
        # this around 1/10 of physical VMEM.
        vmem_block_bytes = max(2 * 1024 * 1024, vmem_cap // 10)
    vmem_limit = min(vmem_cap * 3 // 4, 100 * 1024 * 1024)
    return vmem_block_bytes, vmem_limit


def _finalize(class_sums, N, S, class_weights):
    # 1/(N*S) computed in Python double (exact), then rounded once to f32.
    class_losses = class_sums * jnp.float32(1.0 / (float(N) * float(S)))
    if class_weights is not None:
        loss = jnp.sum(class_losses * class_weights.astype(jnp.float32))
    else:
        loss = jnp.sum(class_losses)
    return loss, class_losses


# ----------------------------------------------------------------------------
# Kernels
# ----------------------------------------------------------------------------
def _dce_kernel_spatial_dense(x_ref, t_ref, out_ref, *, rows_total, rows_tile, needs_mask):
    """Block (1, C, rows_tile, 128): spatial data fills sublanes+lanes 100%; the
    tiny class axis lives on separate vreg tiles, so the class max / exp-sum are
    pure elementwise VPU work."""
    x = x_ref[...].astype(jnp.float32)   # cast after load; bf16 stays bf16 in HBM
    t = t_ref[...].astype(jnp.float32)

    m = jnp.max(x, axis=1, keepdims=True)                        # (1,1,rows,128)
    sh = x - m
    lse = jnp.log(jnp.sum(jnp.exp(sh), axis=1, keepdims=True))   # (1,1,rows,128)
    loss = (lse - sh) * t                                        # -log_softmax(x) * target

    if needs_mask:
        # S % 128 == 0 on this path, so only whole 128-lane rows can overhang.
        # Garbage in OOB rows is confined per-position; one final select suffices.
        row = jax.lax.broadcasted_iota(jnp.int32, (1, 1, rows_tile, 1), 2)
        valid = (row + pl.program_id(1) * rows_tile) < rows_total
        loss = jnp.where(valid, loss, 0.0)

    # Per-class, per-lane partial sums -> lane-dense (C, 128) store.
    out_ref[...] = jnp.sum(loss, axis=2).reshape(out_ref.shape)


def _dce_kernel_flat(x_ref, t_ref, out_ref, *, S, tile_s, needs_mask):
    """Fallback layout for S % 128 != 0: block (1, C, tile_s), class axis on sublanes."""
    x = x_ref[...].astype(jnp.float32)
    t = t_ref[...].astype(jnp.float32)

    m = jnp.max(x, axis=1, keepdims=True)
    sh = x - m
    lse = jnp.log(jnp.sum(jnp.exp(sh), axis=1, keepdims=True))
    loss = (lse - sh) * t

    if needs_mask:
        lane = jax.lax.broadcasted_iota(jnp.int32, (1, 1, tile_s), 2)
        valid = (lane + pl.program_id(1) * tile_s) < S
        loss = jnp.where(valid, loss, 0.0)

    out_ref[...] = jnp.sum(loss, axis=2).reshape(out_ref.shape)


def _dce_labels_kernel(x_ref, lab_ref, out_ref, *, C, rows_total, rows_tile, needs_mask):
    """Label fast path: x block (1, C, rows_tile, 128), labels block (1, rows_tile, 128)
    int32.  Equivalent to the dense kernel with a one-hot target, but never reads a
    dense f32 target tensor from HBM."""
    x = x_ref[...].astype(jnp.float32)
    lab = lab_ref[...]

    m = jnp.max(x, axis=1, keepdims=True)
    sh = x - m
    lse = jnp.log(jnp.sum(jnp.exp(sh), axis=1, keepdims=True))
    nll = lse - sh                                   # (1, C, rows, 128) = -log_softmax(x)

    if needs_mask:
        row = jax.lax.broadcasted_iota(jnp.int32, (1, rows_tile, 1), 1)
        valid = (row + pl.program_id(1) * rows_tile) < rows_total
        lab = jnp.where(valid, lab, -1)              # OOB positions match no class -> 0 loss

    for c in range(C):                               # C is small and static
        loss_c = jnp.where(lab == c, nll[:, c], 0.0)           # (1, rows, 128)
        out_ref[0, 0, c:c + 1, :] = jnp.sum(loss_c, axis=1)    # (1, 128), lane-dense


# ----------------------------------------------------------------------------
# pallas_call wrappers
# ----------------------------------------------------------------------------
def _run_spatial_dense(x, target, vmem_block_bytes, vmem_limit):
    N, C, D, H, W = x.shape
    S = D * H * W
    S128 = S // 128
    x4 = x.reshape(N, C, S128, 128)        # zero-copy views of the native NCDHW buffer
    t4 = target.reshape(N, C, S128, 128)

    bytes_per_row = C * 128 * (jnp.dtype(x.dtype).itemsize + jnp.dtype(target.dtype).itemsize)
    rows_cap = max(8, _round_down(vmem_block_bytes // bytes_per_row, 8))
    rows_tile = S128 if S128 <= rows_cap else rows_cap   # full extent or multiple of 8
    grid_s = pl.cdiv(S128, rows_tile)
    needs_mask = (S128 % rows_tile) != 0

    kernel = functools.partial(_dce_kernel_spatial_dense, rows_total=S128,
                               rows_tile=rows_tile, needs_mask=needs_mask)
    return pl.pallas_call(
        kernel,
        out_shape=jax.ShapeDtypeStruct((N, grid_s, C, 128), jnp.float32),
        grid_spec=pltpu.PrefetchScalarGridSpec(
            num_scalar_prefetch=0,
            grid=(N, grid_s),
            in_specs=[
                pl.BlockSpec((1, C, rows_tile, 128), lambda n, s: (n, 0, s, 0)),
                pl.BlockSpec((1, C, rows_tile, 128), lambda n, s: (n, 0, s, 0)),
            ],
            out_specs=pl.BlockSpec((1, 1, C, 128), lambda n, s: (n, s, 0, 0)),
        ),
        compiler_params=pltpu.CompilerParams(
            dimension_semantics=("parallel", "parallel"),
            vmem_limit_bytes=vmem_limit,
        ),
    )(x4, t4)


def _run_flat(x, target, vmem_block_bytes, vmem_limit):
    N, C, D, H, W = x.shape
    S = D * H * W
    x3 = x.reshape(N, C, S)
    t3 = target.reshape(N, C, S)

    def bytes_per_lane(arr):
        isz = jnp.dtype(arr.dtype).itemsize
        sublane = max(1, 32 // isz)                 # 8 for f32, 16 for bf16, ...
        return _round_up(C, sublane) * isz

    bpl = bytes_per_lane(x3) + bytes_per_lane(t3)
    cap = max(128, _round_down(vmem_block_bytes // bpl, 128))
    tile_s = S if S <= cap else cap
    grid_s = pl.cdiv(S, tile_s)
    needs_mask = (S % tile_s) != 0

    kernel = functools.partial(_dce_kernel_flat, S=S, tile_s=tile_s, needs_mask=needs_mask)
    return pl.pallas_call(
        kernel,
        out_shape=jax.ShapeDtypeStruct((N, grid_s, 1, C), jnp.float32),
        grid_spec=pltpu.PrefetchScalarGridSpec(
            num_scalar_prefetch=0,
            grid=(N, grid_s),
            in_specs=[
                pl.BlockSpec((1, C, tile_s), lambda n, s: (n, 0, s)),
                pl.BlockSpec((1, C, tile_s), lambda n, s: (n, 0, s)),
            ],
            out_specs=pl.BlockSpec((1, 1, 1, C), lambda n, s: (n, s, 0, 0)),
        ),
        compiler_params=pltpu.CompilerParams(
            dimension_semantics=("parallel", "parallel"),
            vmem_limit_bytes=vmem_limit,
        ),
    )(x3, t3)


def dense_cross_entropy(x, target, class_weights=None, *, vmem_block_bytes=None):
    """Pallas implementation of DenseCrossEntropy.forward.

    x, target: (N, C, D, H, W).  Returns (scalar_loss, class_losses[C]) in float32.
    """
    N, C, D, H, W = x.shape
    S = D * H * W
    vmem_block_bytes, vmem_limit = _vmem_config(vmem_block_bytes)

    if S % 128 == 0:
        partial_sums = _run_spatial_dense(x, target, vmem_block_bytes, vmem_limit)
        class_sums = jnp.sum(partial_sums, axis=(0, 1, 3))     # (C,)
    else:
        partial_sums = _run_flat(x, target, vmem_block_bytes, vmem_limit)
        class_sums = jnp.sum(partial_sums, axis=(0, 1, 2))     # (C,)
    return _finalize(class_sums, N, S, class_weights)


def dense_cross_entropy_from_labels(x, labels, class_weights=None, *, vmem_block_bytes=None):
    """Fast path, equivalent to dense_cross_entropy(x, one_hot(labels)).

    x: (N, C, D, H, W); labels: (N, D, H, W) integer class ids.  Avoids reading a
    dense f32 target tensor from HBM (the kernel is HBM-bound on v5e/v6e)."""
    N, C, D, H, W = x.shape
    S = D * H * W
    vmem_block_bytes, vmem_limit = _vmem_config(vmem_block_bytes)

    if S % 128 != 0:
        # TODO(synk): flat-layout label kernel; densify for the ragged case for now.
        onehot = jax.nn.one_hot(labels, C, dtype=jnp.float32, axis=1)
        return dense_cross_entropy(x, onehot, class_weights,
                                   vmem_block_bytes=vmem_block_bytes)

    S128 = S // 128
    x4 = x.reshape(N, C, S128, 128)
    lab3 = labels.astype(jnp.int32).reshape(N, S128, 128)

    bytes_per_row = 128 * (C * jnp.dtype(x.dtype).itemsize + 4)
    rows_cap = max(8, _round_down(vmem_block_bytes // bytes_per_row, 8))
    rows_tile = S128 if S128 <= rows_cap else rows_cap
    grid_s = pl.cdiv(S128, rows_tile)
    needs_mask = (S128 % rows_tile) != 0

    kernel = functools.partial(_dce_labels_kernel, C=C, rows_total=S128,
                               rows_tile=rows_tile, needs_mask=needs_mask)
    partial_sums = pl.pallas_call(
        kernel,
        out_shape=jax.ShapeDtypeStruct((N, grid_s, C, 128), jnp.float32),
        grid_spec=pltpu.PrefetchScalarGridSpec(
            num_scalar_prefetch=0,
            grid=(N, grid_s),
            in_specs=[
                pl.BlockSpec((1, C, rows_tile, 128), lambda n, s: (n, 0, s, 0)),
                pl.BlockSpec((1, rows_tile, 128), lambda n, s: (n, s, 0)),
            ],
            out_specs=pl.BlockSpec((1, 1, C, 128), lambda n, s: (n, s, 0, 0)),
        ),
        compiler_params=pltpu.CompilerParams(
            dimension_semantics=("parallel", "parallel"),
            vmem_limit_bytes=vmem_limit,
        ),
    )(x4, lab3)

    class_sums = jnp.sum(partial_sums, axis=(0, 1, 3))
    return _finalize(class_sums, N, S, class_weights)


def _reference(x, target, class_weights=None):
    """Pure-JAX reference matching the PyTorch module."""
    x = x.astype(jnp.float32)
    target = target.astype(jnp.float32)
    logprobs = jax.nn.log_softmax(x, axis=1)
    loss = -logprobs * target
    class_losses = jnp.mean(loss, axis=(0, 2, 3, 4))
    if class_weights is not None:
        total = jnp.sum(class_losses * class_weights.astype(jnp.float32))
    else:
        total = jnp.sum(class_losses)
    return total, class_losses


if __name__ == "__main__":
    key = jax.random.PRNGKey(0)
    k1, k2, k3, k4 = jax.random.split(key, 4)

    # --- Test 1: spatial-dense path (S = 256), dense targets + label fast path ---
    N, C, D, H, W = 2, 4, 4, 8, 8
    x = jax.random.normal(k1, (N, C, D, H, W), dtype=jnp.float32)
    labels = jax.random.randint(k2, (N, D, H, W), 0, C)
    target = jnp.moveaxis(jax.nn.one_hot(labels, C, dtype=jnp.float32), -1, 1)
    class_weights = jnp.arange(1, C + 1, dtype=jnp.float32) / C

    loss, cls = jax.jit(
        functools.partial(dense_cross_entropy, class_weights=class_weights))(x, target)
    jax.block_until_ready((loss, cls))
    ref_loss, ref_cls = _reference(x, target, class_weights)
    assert jnp.allclose(loss, ref_loss, rtol=1e-5, atol=1e-5)
    assert jnp.allclose(cls, ref_cls, rtol=1e-5, atol=1e-5)

    lloss, lcls = jax.jit(
        functools.partial(dense_cross_entropy_from_labels, class_weights=class_weights))(x, labels)
    jax.block_until_ready((lloss, lcls))
    assert jnp.allclose(lloss, ref_loss, rtol=1e-5, atol=1e-5)
    assert jnp.allclose(lcls, ref_cls, rtol=1e-5, atol=1e-5)

    # --- Test 2: flat fallback path, S = 315 (not a multiple of 128), masked tail ---
    N2, C2, D2, H2, W2 = 1, 3, 5, 7, 9
    x2 = jax.random.normal(k3, (N2, C2, D2, H2, W2), dtype=jnp.float32)
    labels2 = jax.random.randint(k2, (N2, D2, H2, W2), 0, C2)
    target2 = jnp.moveaxis(jax.nn.one_hot(labels2, C2, dtype=jnp.float32), -1, 1)
    loss2, cls2 = jax.jit(
        functools.partial(dense_cross_entropy, vmem_block_bytes=4096))(x2, target2)
    jax.block_until_ready((loss2, cls2))
    ref_loss2, ref_cls2 = _reference(x2, target2)
    assert jnp.allclose(loss2, ref_loss2, rtol=1e-5, atol=1e-5)
    assert jnp.allclose(cls2, ref_cls2, rtol=1e-5, atol=1e-5)

    # --- Test 3: spatial-dense path with masked remainder row tile (S/128 = 10, rows_tile = 8) ---
    N3, C3, D3, H3, W3 = 1, 3, 2, 10, 64
    x3 = jax.random.normal(k4, (N3, C3, D3, H3, W3), dtype=jnp.float32)
    labels3 = jax.random.randint(k2, (N3, D3, H3, W3), 0, C3)
    target3 = jnp.moveaxis(jax.nn.one_hot(labels3, C3, dtype=jnp.float32), -1, 1)
    loss3, cls3 = jax.jit(
        functools.partial(dense_cross_entropy, vmem_block_bytes=4096))(x3, target3)
    lloss3, lcls3 = jax.jit(
        functools.partial(dense_cross_entropy_from_labels, vmem_block_bytes=4096))(x3, labels3)
    jax.block_until_ready((loss3, cls3, lloss3, lcls3))
    ref_loss3, ref_cls3 = _reference(x3, target3)
    assert jnp.allclose(loss3, ref_loss3, rtol=1e-5, atol=1e-5)
    assert jnp.allclose(cls3, ref_cls3, rtol=1e-5, atol=1e-5)
    assert jnp.allclose(lloss3, ref_loss3, rtol=1e-5, atol=1e-5)
    assert jnp.allclose(lcls3, ref_cls3, rtol=1e-5, atol=1e-5)

    print("KERNEL_OK")
</pallas_src>

<mosaic_0001>
module attributes {stable_mosaic.version = 11 : i64} {
  func.func @_dce_kernel_spatial_dense(%arg0: i32, %arg1: i32, %arg2: memref<1x4x2x128xf32, #tpu.memory_space<vmem>>, %arg3: memref<1x4x2x128xf32, #tpu.memory_space<vmem>>, %arg4: memref<1x1x4x128xf32, #tpu.memory_space<vmem>>) attributes {dimension_semantics = [#tpu.dimension_semantics<parallel>, #tpu.dimension_semantics<parallel>], iteration_bounds = array<i64: 2, 1>, scalar_prefetch = 0 : i64, scratch_operands = 0 : i64, tpu.core_type = #tpu.core_type<tc>, window_params = [{transform_indices = @transform_0, window_bounds = array<i64: 1, 4, 2, 128>}, {transform_indices = @transform_1, window_bounds = array<i64: 1, 4, 2, 128>}, {transform_indices = @transform_2, window_bounds = array<i64: 1, 1, 4, 128>}]} {
    %c0 = arith.constant 0 : index
    %c0_0 = arith.constant 0 : index
    %c0_1 = arith.constant 0 : index
    %c0_2 = arith.constant 0 : index
    %0 = vector.load %arg2[%c0, %c0_0, %c0_1, %c0_2] : memref<1x4x2x128xf32, #tpu.memory_space<vmem>>, vector<1x4x2x128xf32>
    %c0_3 = arith.constant 0 : index
    %c0_4 = arith.constant 0 : index
    %c0_5 = arith.constant 0 : index
    %c0_6 = arith.constant 0 : index
    %1 = vector.load %arg3[%c0_3, %c0_4, %c0_5, %c0_6] : memref<1x4x2x128xf32, #tpu.memory_space<vmem>>, vector<1x4x2x128xf32>
    %cst = arith.constant dense<0xFF800000> : vector<1x2x128xf32>
    %2 = vector.multi_reduction <maximumf>, %0, %cst [1] : vector<1x4x2x128xf32> to vector<1x2x128xf32>
    %3 = vector.shape_cast %2 : vector<1x2x128xf32> to vector<1x1x2x128xf32>
    %4 = vector.broadcast %3 : vector<1x1x2x128xf32> to vector<1x4x2x128xf32>
    %5 = arith.subf %0, %4 : vector<1x4x2x128xf32>
    %6 = math.exp %5 : vector<1x4x2x128xf32>
    %cst_7 = arith.constant dense<0.000000e+00> : vector<1x2x128xf32>
    %7 = vector.multi_reduction <add>, %6, %cst_7 [1] : vector<1x4x2x128xf32> to vector<1x2x128xf32>
    %8 = vector.shape_cast %7 : vector<1x2x128xf32> to vector<1x1x2x128xf32>
    %9 = math.log %8 : vector<1x1x2x128xf32>
    %10 = vector.broadcast %9 : vector<1x1x2x128xf32> to vector<1x4x2x128xf32>
    %11 = arith.subf %10, %5 : vector<1x4x2x128xf32>
    %12 = arith.mulf %11, %1 : vector<1x4x2x128xf32>
    %cst_8 = arith.constant dense<0.000000e+00> : vector<1x4x128xf32>
    %13 = vector.multi_reduction <add>, %12, %cst_8 [2] : vector<1x4x2x128xf32> to vector<1x4x128xf32>
    %14 = vector.shape_cast %13 : vector<1x4x128xf32> to vector<1x1x4x128xf32>
    %c0_9 = arith.constant 0 : index
    %c0_10 = arith.constant 0 : index
    %c0_11 = arith.constant 0 : index
    %c0_12 = arith.constant 0 : index
    %15 = vector.load %arg4[%c0_9, %c0_10, %c0_11, %c0_12] : memref<1x1x4x128xf32, #tpu.memory_space<vmem>>, vector<1x1x4x128xf32>
    tpu.vector_store %arg4[%c0_9, %c0_10, %c0_11, %c0_12], %14 {strides = array<i32>} : memref<1x1x4x128xf32, #tpu.memory_space<vmem>>, vector<1x1x4x128xf32>,
    return
  }
  func.func @transform_0(%arg0: i32, %arg1: i32) -> (i32, i32, i32, i32) {
    %c0_i32 = arith.constant 0 : i32
    %c0_i32_0 = arith.constant 0 : i32
    %c0_i32_1 = arith.constant 0 : i32
    return %arg0, %c0_i32, %arg1, %c0_i32_0 : i32, i32, i32, i32
  }
  func.func @transform_1(%arg0: i32, %arg1: i32) -> (i32, i32, i32, i32) {
    %c0_i32 = arith.constant 0 : i32
    %c0_i32_0 = arith.constant 0 : i32
    %c0_i32_1 = arith.constant 0 : i32
    return %arg0, %c0_i32, %arg1, %c0_i32_0 : i32, i32, i32, i32
  }
  func.func @transform_2(%arg0: i32, %arg1: i32) -> (i32, i32, i32, i32) {
    %c0_i32 = arith.constant 0 : i32
    %c0_i32_0 = arith.constant 0 : i32
    %c0_i32_1 = arith.constant 0 : i32
    return %arg0, %arg1, %c0_i32, %c0_i32_0 : i32, i32, i32, i32
  }
}

</mosaic_0001>

<bundles_post_ra>
// kernel: dense_cross_entropy.1
= control target key start
LH: loop header
LB: loop body
LE: loop exit
PB: predicated region body
PF: predicated region fallthrough
CT: control target
= control target key end

     0   :  { %s471_s9 = smov 0   ;;  %s473_s10 = smov 0   ;;  %s527_s0 = inlined_call_operand.vmem [shape: f32[2,4,2,128], index: 0, kind: input, shape index: {}]   ;;  %s528_s1 = inlined_call_operand.vmem [shape: f32[2,4,2,128], index: 1, kind: input, shape index: {}]   ;;  %s529_s2 = inlined_call_operand.vmem [shape: f32[2,1,4,128], index: 2, kind: output, shape index: {}]  }
   0x1   :  { %s475_s11 = smov 0  }
   0x2 LB: > { %s24_s12 = sadd.s32 1, %s450_s10  ;;  %p388_p0 = scmp.ge.s32.totalorder %s454_s11, 1  ;;  %s454_s11 = sphi %s475_s11, %s12_s11   ;;  %s450_s10 = sphi %s473_s10, %s531_s10   ;;  %s446_s9 = sphi %s471_s9, %s530_s9  }
   0x3   : > { %p26_p1 = scmp.ge.s32.totalorder %s24_s12, 2  ;;  %p146_p2 = scmp.lt.s32.totalorder %s454_s11, 3 }
   0x5   : > { %s533_s12 = smov (%p26_p1, %s24_s12), 0  ;;  %p147_p3 = pnand %p388_p0, %p146_p2 }
   0x6   : > { %p181_p4 = scmp.lt.s32.totalorder (!%p147_p3), %s446_s9, 1  ;;  %vm212_vm0 = vcmask (!%p147_p3), 1041408   ;;  %vm281_vm1 = vcmask (!%p147_p3), 1041409   ;;  %vm283_vm2 = vcmask (!%p147_p3), 1042434   ;;  %vm285_vm3 = vcmask (!%p147_p3), 1043459  }
   0x7   : > { %150 = sbr.rel (%p147_p3) target bundleno = 81 (0x51), region = 28 }
   0xe   : > { %s535_s9 = smov (!%p181_p4, %s446_s9), 1 }
   0xf   : > { %s396_s13 = sshll.u32 %s535_s9, 3  ;;  %s393_s20 = sshll.u32 %s535_s9, 2 }
  0x10   : > { %s188_s16 = scalar_lea.vmem %s527_s0, %s396_s13  ;;  %s196_s19 = scalar_lea.vmem %s528_s1, %s396_s13 }
  0x11   : > { %v204_v0 = vld [vmem:[%s188_s16] sm:$0x3]  ;;  %v205_v1 = vld [vmem:[%s188_s16 + $0x2] sm:$0x3]  ;;  %v206_v2 = vld [vmem:[%s188_s16 + $0x4] sm:$0x3]  ;;  %s203_s23 = scalar_lea.vmem %s529_s2, %s393_s20 }
  0x12   : > { %v207_v3 = vld [vmem:[%s188_s16 + $0x6] sm:$0x3]  ;;  %v213_v4 = vsel %vm212_vm0, %v204_v0, -inf  ;;  %v214_v5 = vsel %vm212_vm0, %v205_v1, -inf  ;;  %v215_v6 = vsel %vm212_vm0, %v206_v2, -inf }
  0x13   : > { %v216_v7 = vsel %vm212_vm0, %v207_v3, -inf  ;;  %v217_v8 = vmax.f32 %v213_v4, %v214_v5  ;;  %v208_v31 = vld [vmem:[%s196_s19] sm:$0x3]  ;;  %v209_v33 = vld [vmem:[%s196_s19 + $0x2] sm:$0x3] }
  0x14   : > { %v218_v9 = vmax.f32 %v215_v6, %v216_v7  ;;  %v210_v34 = vld [vmem:[%s196_s19 + $0x4] sm:$0x3]  ;;  %v211_v35 = vld [vmem:[%s196_s19 + $0x6] sm:$0x3] }
  0x16   : > { %v219_v10 = vmax.f32 %v217_v8, %v218_v9 }
  0x18   : > { %v220_v11 = vsub.f32 %v204_v0, %v219_v10  ;;  %v221_v12 = vsub.f32 %v205_v1, %v219_v10  ;;  %v222_v13 = vsub.f32 %v206_v2, %v219_v10  ;;  %v223_v14 = vsub.f32 %v207_v3, %v219_v10 }
  0x1a   : > { %v224_v15 = vmul.f32 1.442695, %v220_v11  ;;  %v226_v16 = vmul.f32 1.442695, %v221_v12  ;;  %v228_v17 = vmul.f32 1.442695, %v222_v13 }
  0x1b   : > { %v230_v18 = vmul.f32 1.442695, %v223_v14 }
  0x1c   : > { %422 = vpow2.f32 %v224_v15 }
  0x1d   : > { %424 = vpow2.f32 %v226_v16 }
  0x1e   : > { %426 = vpow2.f32 %v228_v17 }
  0x1f   : > { %428 = vpow2.f32 %v230_v18 }
  0x26   : > { %v423_v19 = vpop.eup %422 }
  0x27   : > { %v425_v20 = vpop.eup %424  ;;  %v232_v21 = vsel %vm212_vm0, %v423_v19, 0.0 }
  0x28   : > { %v427_v22 = vpop.eup %426  ;;  %v233_v23 = vsel %vm212_vm0, %v425_v20, 0.0 }
  0x29   : > { %v429_v24 = vpop.eup %428  ;;  %v234_v25 = vadd.f32 %v233_v23, %v232_v21  ;;  %v235_v26 = vsel %vm212_vm0, %v427_v22, 0.0 }
  0x2a   : > { %v237_v27 = vsel %vm212_vm0, %v429_v24, 0.0 }
  0x2b   : > { %v236_v28 = vadd.f32 %v235_v26, %v234_v25 }
  0x2d   : > { %v238_v29 = vadd.f32 %v237_v27, %v236_v28 }
  0x2f   : > { %430 = vlog2.f32 %v238_v29 }
  0x39   : > { %v431_v30 = vpop.eup %430 }
  0x3a   : > { %v240_v32 = vmul.f32 0.6931472, %v431_v30 }
  0x3c   : > { %v241_v36 = vsub.f32 %v240_v32, %v220_v11  ;;  %v242_v37 = vsub.f32 %v240_v32, %v221_v12  ;;  %v243_v38 = vsub.f32 %v240_v32, %v222_v13  ;;  %v244_v39 = vsub.f32 %v240_v32, %v223_v14 }
  0x3e   : > { %v245_v40 = vmul.f32 %v241_v36, %v208_v31  ;;  %v246_v41 = vmul.f32 %v242_v37, %v209_v33  ;;  %v247_v42 = vmul.f32 %v243_v38, %v210_v34  ;;  %v248_v43 = vmul.f32 %v244_v39, %v211_v35 }
  0x40   : > { %v249_v44 = vsel %vm212_vm0, %v245_v40, 0.0  ;;  %v256_v45 = vsel %vm212_vm0, %v246_v41, 0.0  ;;  %v263_v46 = vsel %vm212_vm0, %v247_v42, 0.0  ;;  %v270_v47 = vsel %vm212_vm0, %v248_v43, 0.0 }
  0x41   : > { %v250_v48 = vrot.slane %v249_v44, 4  ;;  %v257_v49 = vrot.slane %v256_v45, 4  ;;  %v264_v50 = vrot.slane %v263_v46, 4  ;;  %v271_v51 = vrot.slane %v270_v47, 4 }
  0x43   : > { %v251_v52 = vadd.f32 %v250_v48, %v249_v44  ;;  %v258_v53 = vadd.f32 %v257_v49, %v256_v45  ;;  %v265_v54 = vadd.f32 %v264_v50, %v263_v46  ;;  %v272_v55 = vadd.f32 %v271_v51, %v270_v47 }
  0x45   : > { %v252_v56 = vrot.slane %v251_v52, 2  ;;  %v259_v57 = vrot.slane %v258_v53, 2  ;;  %v266_v58 = vrot.slane %v265_v54, 2  ;;  %v273_v59 = vrot.slane %v272_v55, 2 }
  0x47   : > { %v253_v60 = vadd.f32 %v252_v56, %v251_v52  ;;  %v260_v61 = vadd.f32 %v259_v57, %v258_v53  ;;  %v267_v62 = vadd.f32 %v266_v58, %v265_v54  ;;  %v274_v63 = vadd.f32 %v273_v59, %v272_v55 }
  0x49   : > { %v254_v0 = vrot.slane %v253_v60, 1  ;;  %v261_v1 = vrot.slane %v260_v61, 1  ;;  %v268_v2 = vrot.slane %v267_v62, 1  ;;  %v275_v3 = vrot.slane %v274_v63, 1 }
  0x4b   : > { %v255_v4 = vadd.f32 %v254_v0, %v253_v60  ;;  %v262_v5 = vadd.f32 %v261_v1, %v260_v61  ;;  %v269_v6 = vadd.f32 %v268_v2, %v267_v62  ;;  %v276_v7 = vadd.f32 %v275_v3, %v274_v63 }
  0x4d   : > { %v282_v8 = vsel %vm281_vm1, %v262_v5, %v255_v4 }
  0x4e   : > { %v284_v9 = vsel %vm283_vm2, %v269_v6, %v282_v8 }
  0x4f   : > { %v286_v10 = vsel %vm285_vm3, %v276_v7, %v284_v9 }
  0x50   : > { %288 = vst [vmem:[%s203_s23] sm:$0xf] %v286_v10 }
  0x51 PF: > { %s12_s11 = sadd.s32 1, %s454_s11   ;;  %s530_s9 = smov %s450_s10 }
  0x52   : > { %p9_p5 = scmp.ge.s32.totalorder %s12_s11, 4   ;;  %s531_s10 = smov %s533_s12 }
  0x54   :  { %11 = sbr.rel (!%p9_p5) target bundleno = 2 (0x2), region = 61 }

</bundles_post_ra>
